<compile_context>
chip_gen: v7x
topology: tpu7x:2x2x1
jax: 0.10.0
libtpu: 0.0.40
codegen_flags: <defaults>
</compile_context>

<pallas_src>
import jax
import jax.numpy as jnp
from jax.experimental import pallas as pl
from jax.experimental.pallas import tpu as pltpu

_LANES = 128


def _flatten_lane_dense(x):
    """(L, ...) -> (L, R, 128) in the input dtype, zero-padded to 128 lanes."""
    L = x.shape[0]
    flat = x.reshape(L, -1)
    n = flat.shape[1]
    n_pad = -(-n // _LANES) * _LANES
    if n_pad != n:
        # NOTE: materializes one padded copy in HBM; stack params lane-aligned
        # upstream to avoid it (zero pad adds exactly 0 to every norm).
        flat = jnp.pad(flat, ((0, 0), (0, n_pad - n)))
    return flat.reshape(L, n_pad // _LANES, _LANES)


def _vmem_capacity_bytes():
    try:
        cap = int(pltpu.get_tpu_info().vmem_capacity_bytes)
        if cap > 0:
            return cap
    except Exception:
        pass
    return 64 * 1024 * 1024  # v7x per-core VMEM; conservative default


def _make_kernel(chunk, cps, n_layers, with_bias):
    def kernel(*refs):
        if with_bias:
            (w_ref, wb_ref, b_ref, bb_ref,
             out_ref, wprev_ref, bprev_ref, acc_ref) = refs
        else:
            w_ref, wb_ref, out_ref, wprev_ref, acc_ref = refs
            b_ref = bb_ref = bprev_ref = None

        s = pl.program_id(0)                 # split (TensorCore) index
        c = pl.program_id(1)                 # chunk index within the split
        base = (s * cps + c) * chunk         # first global layer of this window

        @pl.when(c == 0)
        def _():
            acc_ref[...] = jnp.zeros_like(acc_ref)

        def diff_norm(a, b):
            d = a.astype(jnp.float32) - b.astype(jnp.float32)
            return jnp.sqrt(jnp.sum(d * d))

        # Boundary transition: layer `base` vs layer `base - 1`.
        #   c == 0, s > 0 -> against the separately streamed boundary layer.
        #   c > 0         -> against the previous chunk's carry in VMEM.
        @pl.when((c == 0) & (s > 0) & (base < n_layers))
        def _():
            term = diff_norm(w_ref[0], wb_ref[0])
            if with_bias:
                term = term + diff_norm(b_ref[0], bb_ref[0])
            acc_ref[...] = acc_ref[...] + term

        @pl.when((c > 0) & (base < n_layers))
        def _():
            term = diff_norm(w_ref[0], wprev_ref[...])
            if with_bias:
                term = term + diff_norm(b_ref[0], bprev_ref[...])
            acc_ref[...] = acc_ref[...] + term

        # Internal transitions of the chunk (rolled loop; dynamic trip count
        # handles the ragged last chunk in-kernel, no host-side padding).
        if chunk > 1:
            n_int = jnp.clip(n_layers - 1 - base, 0, chunk - 1)

            def body(t, partial):
                partial = partial + diff_norm(w_ref[t + 1], w_ref[t])
                if with_bias:
                    partial = partial + diff_norm(b_ref[t + 1], b_ref[t])
                return partial

            partial = jax.lax.fori_loop(0, n_int, body, jnp.float32(0.0))
            acc_ref[...] = acc_ref[...] + partial

        # Carry this chunk's last layer for the next chunk of the same split.
        if cps > 1:
            @pl.when(c < cps - 1)
            def _():
                wprev_ref[...] = w_ref[chunk - 1]
                if with_bias:
                    bprev_ref[...] = b_ref[chunk - 1]

        # Per-split partial sum, written once on the split's last chunk
        # (lane-dense (1, 8, 128) output block; host reads [s, 0, 0]).
        @pl.when(c == cps - 1)
        def _():
            out_ref[...] = jnp.full(out_ref.shape, acc_ref[0, 0],
                                    dtype=jnp.float32)

    return kernel


def smooth_time_regularization(weights, biases=None, alpha=1e-4, bias=True,
                               n_core_splits=2,
                               chunk_budget_bytes=10 * 1024 * 1024):
    """weights: (L, ...) stacked layer weights; biases: (L, ...) stacked layer
    biases (required iff bias=True). Returns shape-(1,) f32 equal to the
    PyTorch module's 0.5 * alpha * reg."""
    L = int(weights.shape[0])
    if L < 2:
        return jnp.zeros((1,), jnp.float32)
    if bias and biases is None:
        raise ValueError("bias=True requires stacked biases")

    w_ld = _flatten_lane_dense(weights)                    # (L, RW, 128)
    rw = w_ld.shape[1]
    bytes_per_layer = rw * _LANES * w_ld.dtype.itemsize
    if bias:
        b_ld = _flatten_lane_dense(biases)                 # (L, RB, 128)
        rb = b_ld.shape[1]
        bytes_per_layer += rb * _LANES * b_ld.dtype.itemsize

    # Layers per grid step: as many as fit the chunk budget (double-buffered
    # by the pipeline).  No static-unroll cap anymore (rolled fori_loop).
    chunk = int(max(1, min(L, chunk_budget_bytes // bytes_per_layer)))
    total_chunks = -(-L // chunk)

    # Split the chunk axis so v7x's two TensorCores each reduce ~half of the
    # transitions; on 1-TC chips (v5e/v6e) it is just a tiny outer loop.
    n_splits = int(max(1, min(n_core_splits, total_chunks)))
    cps = -(-total_chunks // n_splits)        # chunks per split
    block_stride = cps * chunk                # layers per split
    last_block = total_chunks - 1

    # Explicit scoped-VMEM limit so ~10 MiB chunks double-buffer comfortably.
    vmem_cap = _vmem_capacity_bytes()
    est_vmem = (2 * chunk + 4) * bytes_per_layer + (1 << 20)
    vmem_limit = int(min(max(est_vmem, 32 << 20), int(0.9 * vmem_cap)))

    def w_map(s, c):          # main stream: block index, clamped (no OOB)
        return (jnp.minimum(s * cps + c, last_block), 0, 0)

    def wb_map(s, c):         # cross-split boundary layer (leading block = 1)
        return (jnp.clip(s * block_stride - 1, 0, L - 1), 0, 0)

    inputs = [w_ld, w_ld]
    in_specs = [pl.BlockSpec((chunk, rw, _LANES), w_map),
                pl.BlockSpec((1, rw, _LANES), wb_map)]
    scratch = [pltpu.VMEM((rw, _LANES), w_ld.dtype)]       # carry: last layer
    if bias:
        inputs += [b_ld, b_ld]
        in_specs += [pl.BlockSpec((chunk, rb, _LANES), w_map),
                     pl.BlockSpec((1, rb, _LANES), wb_map)]
        scratch.append(pltpu.VMEM((rb, _LANES), b_ld.dtype))
    scratch.append(pltpu.VMEM((1, 1), jnp.float32))        # running sum

    out = pl.pallas_call(
        _make_kernel(chunk, cps, L, bias),
        out_shape=jax.ShapeDtypeStruct((n_splits, 8, _LANES), jnp.float32),
        grid_spec=pltpu.PrefetchScalarGridSpec(
            num_scalar_prefetch=0,
            grid=(n_splits, cps),
            in_specs=in_specs,
            out_specs=pl.BlockSpec((1, 8, _LANES), lambda s, c: (s, 0, 0)),
            scratch_shapes=scratch,
        ),
        compiler_params=pltpu.CompilerParams(
            dimension_semantics=("parallel", "arbitrary"),
            vmem_limit_bytes=vmem_limit,
        ),
    )(*inputs)

    total = jnp.sum(out[:, 0, 0])
    return (0.5 * alpha * total).astype(jnp.float32).reshape(1)


def _reference(weights, biases, alpha, use_bias):
    """Pure-JAX reference mirroring the PyTorch loop semantics."""
    w = weights.astype(jnp.float32)
    b = biases.astype(jnp.float32) if use_bias else None
    reg = jnp.float32(0.0)
    for l in range(1, w.shape[0]):
        reg = reg + jnp.sqrt(jnp.sum((w[l] - w[l - 1]) ** 2))
        if use_bias:
            reg = reg + jnp.sqrt(jnp.sum((b[l] - b[l - 1]) ** 2))
    return (0.5 * alpha * reg).reshape(1)


if __name__ == "__main__":
    alpha = 1e-4
    L, H = 4, 32
    key = jax.random.PRNGKey(0)
    kw, kb, kw2, kb2 = jax.random.split(key, 4)

    weights = jax.random.normal(kw, (L, H, H), dtype=jnp.float32)
    biases = jax.random.normal(kb, (L, H), dtype=jnp.float32)

    # 1) default path (single chunk, single split), bias=True and bias=False.
    out_b = jax.block_until_ready(
        smooth_time_regularization(weights, biases, alpha=alpha, bias=True))
    out_nb = jax.block_until_ready(
        smooth_time_regularization(weights, alpha=alpha, bias=False))
    ref_b = _reference(weights, biases, alpha, True)
    ref_nb = _reference(weights, None, alpha, False)
    assert out_b.shape == (1,) and out_nb.shape == (1,)
    assert jnp.allclose(out_b, ref_b, rtol=1e-5, atol=1e-8), (out_b, ref_b)
    assert jnp.allclose(out_nb, ref_nb, rtol=1e-5, atol=1e-8), (out_nb, ref_nb)

    # 2) force tiny chunks to exercise multi-chunk + dual-split + VMEM carry +
    #    cross-split boundary + ragged tail (L=7 not a multiple of chunk/split).
    L2 = 7
    w2 = jax.random.normal(kw2, (L2, H, H), dtype=jnp.float32)
    b2 = jax.random.normal(kb2, (L2, H), dtype=jnp.float32)
    ref2 = _reference(w2, b2, alpha, True)

    budget_chunk2 = 2 * (H * H + _LANES) * 4          # -> chunk == 2
    out2 = jax.block_until_ready(
        smooth_time_regularization(w2, b2, alpha=alpha, bias=True,
                                   chunk_budget_bytes=budget_chunk2))
    assert jnp.allclose(out2, ref2, rtol=1e-5, atol=1e-8), (out2, ref2)

    out3 = jax.block_until_ready(                     # chunk == 1 path
        smooth_time_regularization(w2, b2, alpha=alpha, bias=True,
                                   chunk_budget_bytes=1))
    assert jnp.allclose(out3, ref2, rtol=1e-5, atol=1e-8), (out3, ref2)

    # 3) native bf16 streaming (upcast to f32 only inside the kernel).
    w2_bf = w2.astype(jnp.bfloat16)
    b2_bf = b2.astype(jnp.bfloat16)
    ref_bf = _reference(w2_bf, b2_bf, alpha, True)
    budget_bf = 2 * (H * H + _LANES) * 2              # -> chunk == 2 in bf16
    out_bf = jax.block_until_ready(
        smooth_time_regularization(w2_bf, b2_bf, alpha=alpha, bias=True,
                                   chunk_budget_bytes=budget_bf))
    assert jnp.allclose(out_bf, ref_bf, rtol=5e-5, atol=1e-8), (out_bf, ref_bf)

    print("KERNEL_OK")
</pallas_src>

<mosaic_0001>
module attributes {stable_mosaic.version = 11 : i64} {
  func.func @kernel(%arg0: i32, %arg1: i32, %arg2: memref<4x8x128xf32, #tpu.memory_space<vmem>>, %arg3: memref<1x8x128xf32, #tpu.memory_space<vmem>>, %arg4: memref<4x1x128xf32, #tpu.memory_space<vmem>>, %arg5: memref<1x1x128xf32, #tpu.memory_space<vmem>>, %arg6: memref<1x8x128xf32, #tpu.memory_space<vmem>>, %arg7: memref<8x128xf32, #tpu.memory_space<vmem>>, %arg8: memref<1x128xf32, #tpu.memory_space<vmem>>, %arg9: memref<1x1xf32, #tpu.memory_space<vmem>>) attributes {dimension_semantics = [#tpu.dimension_semantics<parallel>, #tpu.dimension_semantics<arbitrary>], iteration_bounds = array<i64: 1, 1>, scalar_prefetch = 0 : i64, scratch_operands = 3 : i64, tpu.core_type = #tpu.core_type<tc>, window_params = [{transform_indices = @transform_0, window_bounds = array<i64: 4, 8, 128>}, {transform_indices = @transform_1, window_bounds = array<i64: 1, 8, 128>}, {transform_indices = @transform_2, window_bounds = array<i64: 4, 1, 128>}, {transform_indices = @transform_3, window_bounds = array<i64: 1, 1, 128>}, {transform_indices = @transform_4, window_bounds = array<i64: 1, 8, 128>}]} {
    %c1_i32 = arith.constant 1 : i32
    %0 = arith.muli %arg0, %c1_i32 : i32
    %1 = arith.addi %0, %arg1 : i32
    %c4_i32 = arith.constant 4 : i32
    %2 = arith.muli %1, %c4_i32 : i32
    %c0_i32 = arith.constant 0 : i32
    %3 = arith.cmpi eq, %arg1, %c0_i32 : i32
    %4 = arith.extui %3 : i1 to i32
    %c0_i32_0 = arith.constant 0 : i32
    %5 = arith.cmpi ne, %4, %c0_i32_0 : i32
    scf.if %5 {
      %cst_17 = arith.constant 0.000000e+00 : f32
      %31 = vector.broadcast %cst_17 : f32 to vector<1x1xf32>
      %c0_18 = arith.constant 0 : index
      %c0_19 = arith.constant 0 : index
      %32 = vector.load %arg9[%c0_18, %c0_19] : memref<1x1xf32, #tpu.memory_space<vmem>>, vector<1x1xf32>
      tpu.vector_store %arg9[%c0_18, %c0_19], %31 {strides = array<i32>} : memref<1x1xf32, #tpu.memory_space<vmem>>, vector<1x1xf32>,
    } else {
    }
    %c0_i32_1 = arith.constant 0 : i32
    %6 = arith.cmpi eq, %arg1, %c0_i32_1 : i32
    %c0_i32_2 = arith.constant 0 : i32
    %7 = arith.cmpi sgt, %arg0, %c0_i32_2 : i32
    %8 = arith.andi %6, %7 : i1
    %c4_i32_3 = arith.constant 4 : i32
    %9 = arith.cmpi slt, %2, %c4_i32_3 : i32
    %10 = arith.andi %8, %9 : i1
    %11 = arith.extui %10 : i1 to i32
    %c0_i32_4 = arith.constant 0 : i32
    %12 = arith.cmpi ne, %11, %c0_i32_4 : i32
    scf.if %12 {
      %c0_17 = arith.constant 0 : index
      %c0_18 = arith.constant 0 : index
      %c0_19 = arith.constant 0 : index
      %31 = vector.load %arg2[%c0_17, %c0_18, %c0_19] : memref<4x8x128xf32, #tpu.memory_space<vmem>>, vector<1x8x128xf32>
      %32 = vector.shape_cast %31 : vector<1x8x128xf32> to vector<8x128xf32>
      %c0_20 = arith.constant 0 : index
      %c0_21 = arith.constant 0 : index
      %c0_22 = arith.constant 0 : index
      %33 = vector.load %arg3[%c0_20, %c0_21, %c0_22] : memref<1x8x128xf32, #tpu.memory_space<vmem>>, vector<1x8x128xf32>
      %34 = vector.shape_cast %33 : vector<1x8x128xf32> to vector<8x128xf32>
      %35 = arith.subf %32, %34 : vector<8x128xf32>
      %36 = arith.mulf %35, %35 : vector<8x128xf32>
      %37 = vector.shape_cast %36 : vector<8x128xf32> to vector<1x8x128xf32>
      %cst_23 = arith.constant dense<0.000000e+00> : vector<1xf32>
      %38 = vector.multi_reduction <add>, %37, %cst_23 [1, 2] : vector<1x8x128xf32> to vector<1xf32>
      %39 = vector.shape_cast %38 : vector<1xf32> to vector<1x1x1xf32>
      %40 = vector.extract %39[0, 0, 0] : f32 from vector<1x1x1xf32>
      %41 = math.sqrt %40 : f32
      %c0_24 = arith.constant 0 : index
      %c0_25 = arith.constant 0 : index
      %c0_26 = arith.constant 0 : index
      %42 = vector.load %arg4[%c0_24, %c0_25, %c0_26] : memref<4x1x128xf32, #tpu.memory_space<vmem>>, vector<1x1x128xf32>
      %43 = vector.shape_cast %42 : vector<1x1x128xf32> to vector<1x128xf32>
      %c0_27 = arith.constant 0 : index
      %c0_28 = arith.constant 0 : index
      %c0_29 = arith.constant 0 : index
      %44 = vector.load %arg5[%c0_27, %c0_28, %c0_29] : memref<1x1x128xf32, #tpu.memory_space<vmem>>, vector<1x1x128xf32>
      %45 = vector.shape_cast %44 : vector<1x1x128xf32> to vector<1x128xf32>
      %46 = arith.subf %43, %45 : vector<1x128xf32>
      %47 = arith.mulf %46, %46 : vector<1x128xf32>
      %48 = vector.shape_cast %47 : vector<1x128xf32> to vector<1x1x128xf32>
      %cst_30 = arith.constant dense<0.000000e+00> : vector<1xf32>
      %49 = vector.multi_reduction <add>, %48, %cst_30 [1, 2] : vector<1x1x128xf32> to vector<1xf32>
      %50 = vector.shape_cast %49 : vector<1xf32> to vector<1x1x1xf32>
      %51 = vector.extract %50[0, 0, 0] : f32 from vector<1x1x1xf32>
      %52 = math.sqrt %51 : f32
      %53 = arith.addf %41, %52 : f32
      %c0_31 = arith.constant 0 : index
      %c0_32 = arith.constant 0 : index
      %54 = vector.load %arg9[%c0_31, %c0_32] : memref<1x1xf32, #tpu.memory_space<vmem>>, vector<1x1xf32>
      %55 = vector.broadcast %53 : f32 to vector<1x1xf32>
      %56 = arith.addf %54, %55 : vector<1x1xf32>
      %c0_33 = arith.constant 0 : index
      %c0_34 = arith.constant 0 : index
      %57 = vector.load %arg9[%c0_33, %c0_34] : memref<1x1xf32, #tpu.memory_space<vmem>>, vector<1x1xf32>
      tpu.vector_store %arg9[%c0_33, %c0_34], %56 {strides = array<i32>} : memref<1x1xf32, #tpu.memory_space<vmem>>, vector<1x1xf32>,
    } else {
    }
    %c0_i32_5 = arith.constant 0 : i32
    %13 = arith.cmpi sgt, %arg1, %c0_i32_5 : i32
    %c4_i32_6 = arith.constant 4 : i32
    %14 = arith.cmpi slt, %2, %c4_i32_6 : i32
    %15 = arith.andi %13, %14 : i1
    %16 = arith.extui %15 : i1 to i32
    %c0_i32_7 = arith.constant 0 : i32
    %17 = arith.cmpi ne, %16, %c0_i32_7 : i32
    scf.if %17 {
      %c0_17 = arith.constant 0 : index
      %c0_18 = arith.constant 0 : index
      %c0_19 = arith.constant 0 : index
      %31 = vector.load %arg2[%c0_17, %c0_18, %c0_19] : memref<4x8x128xf32, #tpu.memory_space<vmem>>, vector<1x8x128xf32>
      %32 = vector.shape_cast %31 : vector<1x8x128xf32> to vector<8x128xf32>
      %c0_20 = arith.constant 0 : index
      %c0_21 = arith.constant 0 : index
      %33 = vector.load %arg7[%c0_20, %c0_21] : memref<8x128xf32, #tpu.memory_space<vmem>>, vector<8x128xf32>
      %34 = arith.subf %32, %33 : vector<8x128xf32>
      %35 = arith.mulf %34, %34 : vector<8x128xf32>
      %36 = vector.shape_cast %35 : vector<8x128xf32> to vector<1x8x128xf32>
      %cst_22 = arith.constant dense<0.000000e+00> : vector<1xf32>
      %37 = vector.multi_reduction <add>, %36, %cst_22 [1, 2] : vector<1x8x128xf32> to vector<1xf32>
      %38 = vector.shape_cast %37 : vector<1xf32> to vector<1x1x1xf32>
      %39 = vector.extract %38[0, 0, 0] : f32 from vector<1x1x1xf32>
      %40 = math.sqrt %39 : f32
      %c0_23 = arith.constant 0 : index
      %c0_24 = arith.constant 0 : index
      %c0_25 = arith.constant 0 : index
      %41 = vector.load %arg4[%c0_23, %c0_24, %c0_25] : memref<4x1x128xf32, #tpu.memory_space<vmem>>, vector<1x1x128xf32>
      %42 = vector.shape_cast %41 : vector<1x1x128xf32> to vector<1x128xf32>
      %c0_26 = arith.constant 0 : index
      %c0_27 = arith.constant 0 : index
      %43 = vector.load %arg8[%c0_26, %c0_27] : memref<1x128xf32, #tpu.memory_space<vmem>>, vector<1x128xf32>
      %44 = arith.subf %42, %43 : vector<1x128xf32>
      %45 = arith.mulf %44, %44 : vector<1x128xf32>
      %46 = vector.shape_cast %45 : vector<1x128xf32> to vector<1x1x128xf32>
      %cst_28 = arith.constant dense<0.000000e+00> : vector<1xf32>
      %47 = vector.multi_reduction <add>, %46, %cst_28 [1, 2] : vector<1x1x128xf32> to vector<1xf32>
      %48 = vector.shape_cast %47 : vector<1xf32> to vector<1x1x1xf32>
      %49 = vector.extract %48[0, 0, 0] : f32 from vector<1x1x1xf32>
      %50 = math.sqrt %49 : f32
      %51 = arith.addf %40, %50 : f32
      %c0_29 = arith.constant 0 : index
      %c0_30 = arith.constant 0 : index
      %52 = vector.load %arg9[%c0_29, %c0_30] : memref<1x1xf32, #tpu.memory_space<vmem>>, vector<1x1xf32>
      %53 = vector.broadcast %51 : f32 to vector<1x1xf32>
      %54 = arith.addf %52, %53 : vector<1x1xf32>
      %c0_31 = arith.constant 0 : index
      %c0_32 = arith.constant 0 : index
      %55 = vector.load %arg9[%c0_31, %c0_32] : memref<1x1xf32, #tpu.memory_space<vmem>>, vector<1x1xf32>
      tpu.vector_store %arg9[%c0_31, %c0_32], %54 {strides = array<i32>} : memref<1x1xf32, #tpu.memory_space<vmem>>, vector<1x1xf32>,
    } else {
    }
    %c3_i32 = arith.constant 3 : i32
    %18 = arith.subi %c3_i32, %2 : i32
    %c0_i32_8 = arith.constant 0 : i32
    %c3_i32_9 = arith.constant 3 : i32
    %19 = arith.maxsi %c0_i32_8, %18 : i32
    %20 = arith.minsi %c3_i32_9, %19 : i32
    %c0_i32_10 = arith.constant 0 : i32
    %cst = arith.constant 0.000000e+00 : f32
    %21 = arith.subi %20, %c0_i32_10 : i32
    %22 = arith.addi %c0_i32_10, %21 : i32
    %c1_i32_11 = arith.constant 1 : i32
    %23 = scf.for %arg10 = %c0_i32_10 to %22 step %c1_i32_11 iter_args(%arg11 = %cst) -> (f32)  : i32 {
      %c1_i32_17 = arith.constant 1 : i32
      %31 = arith.addi %arg10, %c1_i32_17 : i32
      %32 = arith.index_cast %31 : i32 to index
      %c0_18 = arith.constant 0 : index
      %c0_19 = arith.constant 0 : index
      %33 = vector.load %arg2[%32, %c0_18, %c0_19] : memref<4x8x128xf32, #tpu.memory_space<vmem>>, vector<1x8x128xf32>
      %34 = vector.shape_cast %33 : vector<1x8x128xf32> to vector<8x128xf32>
      %35 = arith.index_cast %arg10 : i32 to index
      %c0_20 = arith.constant 0 : index
      %c0_21 = arith.constant 0 : index
      %36 = vector.load %arg2[%35, %c0_20, %c0_21] : memref<4x8x128xf32, #tpu.memory_space<vmem>>, vector<1x8x128xf32>
      %37 = vector.shape_cast %36 : vector<1x8x128xf32> to vector<8x128xf32>
      %38 = arith.subf %34, %37 : vector<8x128xf32>
      %39 = arith.mulf %38, %38 : vector<8x128xf32>
      %40 = vector.shape_cast %39 : vector<8x128xf32> to vector<1x8x128xf32>
      %cst_22 = arith.constant dense<0.000000e+00> : vector<1xf32>
      %41 = vector.multi_reduction <add>, %40, %cst_22 [1, 2] : vector<1x8x128xf32> to vector<1xf32>
      %42 = vector.shape_cast %41 : vector<1xf32> to vector<1x1x1xf32>
      %43 = vector.extract %42[0, 0, 0] : f32 from vector<1x1x1xf32>
      %44 = math.sqrt %43 : f32
      %45 = arith.addf %arg11, %44 : f32
      %c1_i32_23 = arith.constant 1 : i32
      %46 = arith.addi %arg10, %c1_i32_23 : i32
      %47 = arith.index_cast %46 : i32 to index
      %c0_24 = arith.constant 0 : index
      %c0_25 = arith.constant 0 : index
      %48 = vector.load %arg4[%47, %c0_24, %c0_25] : memref<4x1x128xf32, #tpu.memory_space<vmem>>, vector<1x1x128xf32>
      %49 = vector.shape_cast %48 : vector<1x1x128xf32> to vector<1x128xf32>
      %50 = arith.index_cast %arg10 : i32 to index
      %c0_26 = arith.constant 0 : index
      %c0_27 = arith.constant 0 : index
      %51 = vector.load %arg4[%50, %c0_26, %c0_27] : memref<4x1x128xf32, #tpu.memory_space<vmem>>, vector<1x1x128xf32>
      %52 = vector.shape_cast %51 : vector<1x1x128xf32> to vector<1x128xf32>
      %53 = arith.subf %49, %52 : vector<1x128xf32>
      %54 = arith.mulf %53, %53 : vector<1x128xf32>
      %55 = vector.shape_cast %54 : vector<1x128xf32> to vector<1x1x128xf32>
      %cst_28 = arith.constant dense<0.000000e+00> : vector<1xf32>
      %56 = vector.multi_reduction <add>, %55, %cst_28 [1, 2] : vector<1x1x128xf32> to vector<1xf32>
      %57 = vector.shape_cast %56 : vector<1xf32> to vector<1x1x1xf32>
      %58 = vector.extract %57[0, 0, 0] : f32 from vector<1x1x1xf32>
      %59 = math.sqrt %58 : f32
      %60 = arith.addf %45, %59 : f32
      scf.yield %60 : f32
    }
    %c0 = arith.constant 0 : index
    %c0_12 = arith.constant 0 : index
    %24 = vector.load %arg9[%c0, %c0_12] : memref<1x1xf32, #tpu.memory_space<vmem>>, vector<1x1xf32>
    %25 = vector.broadcast %23 : f32 to vector<1x1xf32>
    %26 = arith.addf %24, %25 : vector<1x1xf32>
    %c0_13 = arith.constant 0 : index
    %c0_14 = arith.constant 0 : index
    %27 = vector.load %arg9[%c0_13, %c0_14] : memref<1x1xf32, #tpu.memory_space<vmem>>, vector<1x1xf32>
    tpu.vector_store %arg9[%c0_13, %c0_14], %26 {strides = array<i32>} : memref<1x1xf32, #tpu.memory_space<vmem>>, vector<1x1xf32>,
    %c0_i32_15 = arith.constant 0 : i32
    %28 = arith.cmpi eq, %arg1, %c0_i32_15 : i32
    %29 = arith.extui %28 : i1 to i32
    %c0_i32_16 = arith.constant 0 : i32
    %30 = arith.cmpi ne, %29, %c0_i32_16 : i32
    scf.if %30 {
      %c0_17 = arith.constant 0 : index
      %c0_18 = arith.constant 0 : index
      %31 = vector.load %arg9[%c0_17, %c0_18] : memref<1x1xf32, #tpu.memory_space<vmem>>, vector<1x1xf32>
      %32 = vector.extract %31[0, 0] : f32 from vector<1x1xf32>
      %33 = vector.broadcast %32 : f32 to vector<1x8x128xf32>
      %c0_19 = arith.constant 0 : index
      %c0_20 = arith.constant 0 : index
      %c0_21 = arith.constant 0 : index
      %34 = vector.load %arg6[%c0_19, %c0_20, %c0_21] : memref<1x8x128xf32, #tpu.memory_space<vmem>>, vector<1x8x128xf32>
      tpu.vector_store %arg6[%c0_19, %c0_20, %c0_21], %33 {strides = array<i32>} : memref<1x8x128xf32, #tpu.memory_space<vmem>>, vector<1x8x128xf32>,
    } else {
    }
    return
  }
  func.func @transform_0(%arg0: i32, %arg1: i32) -> (i32, i32, i32) {
    %c1_i32 = arith.constant 1 : i32
    %0 = arith.muli %arg0, %c1_i32 : i32
    %1 = arith.addi %0, %arg1 : i32
    %c0_i32 = arith.constant 0 : i32
    %2 = arith.minsi %1, %c0_i32 : i32
    %c0_i32_0 = arith.constant 0 : i32
    %c0_i32_1 = arith.constant 0 : i32
    %c0_i32_2 = arith.constant 0 : i32
    return %2, %c0_i32_0, %c0_i32_1 : i32, i32, i32
  }
  func.func @transform_1(%arg0: i32, %arg1: i32) -> (i32, i32, i32) {
    %c4_i32 = arith.constant 4 : i32
    %0 = arith.muli %arg0, %c4_i32 : i32
    %c1_i32 = arith.constant 1 : i32
    %1 = arith.subi %0, %c1_i32 : i32
    %c0_i32 = arith.constant 0 : i32
    %c3_i32 = arith.constant 3 : i32
    %2 = arith.maxsi %c0_i32, %1 : i32
    %3 = arith.minsi %c3_i32, %2 : i32
    %c0_i32_0 = arith.constant 0 : i32
    %c0_i32_1 = arith.constant 0 : i32
    %c0_i32_2 = arith.constant 0 : i32
    return %3, %c0_i32_0, %c0_i32_1 : i32, i32, i32
  }
  func.func @transform_2(%arg0: i32, %arg1: i32) -> (i32, i32, i32) {
    %c1_i32 = arith.constant 1 : i32
    %0 = arith.muli %arg0, %c1_i32 : i32
    %1 = arith.addi %0, %arg1 : i32
    %c0_i32 = arith.constant 0 : i32
    %2 = arith.minsi %1, %c0_i32 : i32
    %c0_i32_0 = arith.constant 0 : i32
    %c0_i32_1 = arith.constant 0 : i32
    %c0_i32_2 = arith.constant 0 : i32
    return %2, %c0_i32_0, %c0_i32_1 : i32, i32, i32
  }
  func.func @transform_3(%arg0: i32, %arg1: i32) -> (i32, i32, i32) {
    %c4_i32 = arith.constant 4 : i32
    %0 = arith.muli %arg0, %c4_i32 : i32
    %c1_i32 = arith.constant 1 : i32
    %1 = arith.subi %0, %c1_i32 : i32
    %c0_i32 = arith.constant 0 : i32
    %c3_i32 = arith.constant 3 : i32
    %2 = arith.maxsi %c0_i32, %1 : i32
    %3 = arith.minsi %c3_i32, %2 : i32
    %c0_i32_0 = arith.constant 0 : i32
    %c0_i32_1 = arith.constant 0 : i32
    %c0_i32_2 = arith.constant 0 : i32
    return %3, %c0_i32_0, %c0_i32_1 : i32, i32, i32
  }
  func.func @transform_4(%arg0: i32, %arg1: i32) -> (i32, i32, i32) {
    %c0_i32 = arith.constant 0 : i32
    %c0_i32_0 = arith.constant 0 : i32
    %c0_i32_1 = arith.constant 0 : i32
    return %arg0, %c0_i32, %c0_i32_0 : i32, i32, i32
  }
}

</mosaic_0001>

<bundles_post_ra>
// kernel: tpu_custom_call.1
= control target key start
LH: loop header
LB: loop body
LE: loop exit
PB: predicated region body
PF: predicated region fallthrough
CT: control target
= control target key end

     0   :  { %9 = vsyncpa [#allocation6], 0  ;;  %s603_s0 = inlined_call_operand.hbm [shape: f32[4,8,128], index: 0, kind: input, shape index: {}]   ;;  %s604_s1 = inlined_call_operand.hbm [shape: f32[4,8,128], index: 1, kind: input, shape index: {}]   ;;  %s605_s2 = inlined_call_operand.vmem [shape: f32[4,1,128], index: 2, kind: input, shape index: {}]   ;;  %s606_s3 = inlined_call_operand.vmem [shape: f32[4,1,128], index: 3, kind: input, shape index: {}]   ;;  %s607_s4 = inlined_call_operand.hbm [shape: f32[1,8,128], index: 4, kind: output, shape index: {}]  }
   0x1   :  { %10 = vsyncpa [#allocation9], 0 }
   0x2   :  { %11 = vsyncpa [#allocation7], 0  ;;  %s510_s15 = smov [#allocation5]   ;;  %s422_s19 = scalar_lea.hbm %s603_s0, 512 }
   0x3   :  { %s23_s16 = sshll.u32 %s510_s15, 4  ;;  %p423_p0 = scmp.ne.s32.totalorder %s603_s0, %s422_s19  ;;  %s24_s16 = int_to_ptr.vmem [resolvable:$true] %s23_s16 }
   0x4   :  { %p426_p1 = scmp.lt.u32.totalorder %s422_s19, %s603_s0 }
   0x6   :  { %p428_p2 = pnand %p426_p1, %p423_p0 }
   0x8   :  { %431 = shalt.err (!%p428_p2)
}
   0x9   :  { %s432_s3 = scalar_lea.vmem %s24_s16, 512  ;;  %p437_p4 = scmp.lt.s32.totalorder %s24_s16, %s24_s16 }
   0xa   :  { %p433_p3 = scmp.ne.s32.totalorder %s24_s16, %s432_s3  ;;  %p438_p5 = scmp.lt.s32.totalorder %s432_s3, %s432_s3 }
   0xc   :  { %p439_p6 = por %p438_p5, %p437_p4 }
   0xe   :  { %p440_p7 = pnand %p439_p6, %p433_p3 }
  0x10   :  { %443 = shalt.err (!%p440_p7)
}
  0x11   :  { %s511_s24 = smov 128   ;;  %s512_s25 = smov 8  }
  0x12   :  { %29 = dma.hbm_to_vmem [thread:$0]  %s603_s0, 512, %s24_s16, [#allocation6], %s511_s24, %s511_s24, %s512_s25  }
  0x13   :  { %s513_s28 = smov [#allocation8]   ;;  %s444_s6 = scalar_lea.hbm %s604_s1, 128 }
  0x14   :  { %s44_s29 = sshll.u32 %s513_s28, 4  ;;  %p445_p8 = scmp.ne.s32.totalorder %s604_s1, %s444_s6  ;;  %s45_s29 = int_to_ptr.vmem [resolvable:$true] %s44_s29 }
  0x15   :  { %s446_s11 = scalar_lea.hbm %s604_s1, 512  ;;  %p448_p10 = scmp.lt.u32.totalorder %s444_s6, %s604_s1 }
  0x16   :  { %p447_p9 = scmp.lt.u32.totalorder %s446_s11, %s444_s6 }
  0x18   :  { %p449_p11 = por %p448_p10, %p447_p9 }
  0x1a   :  { %p450_p12 = pnand %p449_p11, %p445_p8 }
  0x1c   :  { %453 = shalt.err (!%p450_p12)
}
  0x1d   :  { %s454_s0 = scalar_lea.vmem %s45_s29, 128  ;;  %p459_p0 = scmp.lt.s32.totalorder %s45_s29, %s45_s29 }
  0x1e   :  { %p455_p13 = scmp.ne.s32.totalorder %s45_s29, %s454_s0  ;;  %p460_p1 = scmp.lt.s32.totalorder %s454_s0, %s454_s0 }
  0x20   :  { %p461_p2 = por %p460_p1, %p459_p0 }
  0x22   :  { %p462_p3 = pnand %p461_p2, %p455_p13 }
  0x24   :  { %465 = shalt.err (!%p462_p3)
}
  0x25   :  { %47 = dma.hbm_to_vmem [thread:$0]  %s604_s1, 128, %s45_s29, [#allocation9]  }
  0x26   :  { %496 = dma.done.wait [#allocation6], 512  }
  0x27   :  { %497 = vsyncadd [#allocation6], 4294966784 }
  0x28   :  { %498 = dma.done.wait [#allocation9], 128  }
  0x29   :  { %499 = vsyncadd [#allocation9], 4294967168  ;;  %vm142_vm0 = vcmask 0   ;;  %v514_v0 = vmov 0.0   ;;  %s569_s16 = smov 0.0   ;;  %s571_s17 = smov 0  }
  0x2a   :  { %143 = vst.msk [vmem:[#allocation4] sm:$0x1] %vm142_vm0, %v514_v0 }
  0x2b LB: > { %s382_s1 = sshll.u32 %s508_s17, 3  ;;  %s371_s20 = scalar_lea.vmem %s605_s2, %s508_s17  ;;  %vm307_vm1 = vcmask 1040384   ;;  %s508_s17 = sphi %s571_s17, %s269_s17   ;;  %s504_s16 = sphi %s569_s16, %s608_s16  }
  0x2c   : > { %v385_v1 = vld [vmem:[%s371_s20 + $0x1] sm:$0x1]  ;;  %v304_v2 = vld [vmem:[%s371_s20] sm:$0x1]  ;;  %s367_s21 = scalar_lea.vmem [#allocation5], %s382_s1  ;;  %s269_s17 = sadd.s32 1, %s508_s17  }
  0x2d   : > { %v383_v3 = vld [vmem:[%s367_s21 + $0x8] sm:$0xff]  ;;  %v279_v4 = vld [vmem:[%s367_s21] sm:$0xff]  ;;  %v305_v5 = vsub.f32 %v385_v1, %v304_v2  ;;  %p268_p4 = scmp.ge.s32.totalorder %s269_s17, 3 }
  0x2e   : > { %v280_v6 = vsub.f32 %v383_v3, %v279_v4  ;;  %s515_s27 = smov (%p268_p4), [#allocation10]  }
  0x2f   : > { %v306_v7 = vmul.f32 %v305_v5, %v305_v5  ;;  %s346_s28 = sshll.u32 (%p268_p4), %s515_s27, 4  ;;  %s347_s28 = int_to_ptr.vmem [resolvable:$true] %s346_s28 }
  0x30   : > { %v281_v8 = vmul.f32 %v280_v6, %v280_v6  ;;  %s466_s30 = scalar_lea.vmem (%p268_p4), %s347_s28, 128  ;;  %p471_p6 = scmp.lt.s32.totalorder (%p268_p4), %s347_s28, %s347_s28 }
  0x31   : > { %v308_v9 = vsel %vm307_vm1, %v306_v7, 0.0  ;;  %v328_v36 = vld [vmem:[#allocation4] sm:$0x1] (%p268_p4)  ;;  %p467_p5 = scmp.ne.s32.totalorder (%p268_p4), %s347_s28, %s466_s30  ;;  %p472_p7 = scmp.lt.s32.totalorder (%p268_p4), %s466_s30, %s466_s30 }
  0x32   : > { %282 = vadd.xlane.f32.xlu0 %v281_v8 }
  0x33   :  { %p473_p8 = por (%p268_p4), %p472_p7, %p471_p6 }
  0x35   :  { %p474_p9 = pnand (%p268_p4), %p473_p8, %p467_p5 }
  0x36   : > { %309 = vadd.xlane.f32.xlu0 %v308_v9 }
  0xbf   : > { %v283_v10 = vpop.xlane.xlu0 %282 }
  0xc0   : > { %v284_v11 = vrot.slane %v283_v10, 4 }
  0xc2   : > { %v285_v12 = vadd.f32 %v284_v11, %v283_v10 }
  0xc3   : > { %v310_v17 = vpop.xlane.xlu0 %309 }
  0xc4   : > { %v286_v13 = vrot.slane %v285_v12, 2  ;;  %v311_v18 = vrot.slane %v310_v17, 4 }
  0xc6   : > { %v287_v14 = vadd.f32 %v286_v13, %v285_v12  ;;  %v312_v19 = vadd.f32 %v311_v18, %v310_v17 }
  0xc8   : > { %v288_v15 = vrot.slane %v287_v14, 1  ;;  %v313_v21 = vrot.slane %v312_v19, 2 }
  0xca   : > { %v289_v16 = vadd.f32 %v288_v15, %v287_v14  ;;  %v314_v22 = vadd.f32 %v313_v21, %v312_v19 }
  0xcc   : > { %386 = vpush %v289_v16  ;;  %v315_v24 = vrot.slane %v314_v22, 1 }
  0xce   : > { %v316_v29 = vadd.f32 %v315_v24, %v314_v22 }
  0xfd   : > { %s387_s22 = spop %386 }
  0xfe   : > { %v291_v20 = vstv %s387_s22 }
  0xff   : > { %418 = vrsqrt.f32 %v291_v20  ;;  %vm294_vm2 = vcmp.eq.f32.partialorder %v291_v20, inf  ;;  %v297_v26 = vand.u32 2147483648, %v291_v20  ;;  %vm296_vm3 = vcmp.eq.f32.partialorder %v291_v20, 0.0 }
 0x109   : > { %v419_v23 = vpop.eup %418 }
 0x10a   : > { %v293_v25 = vmul.f32 %v419_v23, %v291_v20 }
 0x10c   : > { %v295_v27 = vsel %vm294_vm2, %v291_v20, %v293_v25 }
 0x10d   : > { %v298_v28 = vsel %vm296_vm3, %v297_v26, %v295_v27 }
 0x10e   : > { %388 = vpush %v298_v28 }
 0x10f   : > { %390 = vpush %v316_v29 }
 0x13f   : > { %s389_s23 = spop %388 }
 0x140   : > { %s391_s3 = spop %390  ;;  %s300_s24 = sadd.f32 %s504_s16, %s389_s23 }
 0x141   : > { %v318_v30 = vstv %s391_s3 }
 0x142   : > { %420 = vrsqrt.f32 %v318_v30  ;;  %vm321_vm4 = vcmp.eq.f32.partialorder %v318_v30, inf  ;;  %v324_v33 = vand.u32 2147483648, %v318_v30  ;;  %vm323_vm5 = vcmp.eq.f32.partialorder %v318_v30, 0.0 }
 0x14c   : > { %v421_v31 = vpop.eup %420 }
 0x14d   : > { %v320_v32 = vmul.f32 %v421_v31, %v318_v30 }
 0x14f   : > { %v322_v34 = vsel %vm321_vm4, %v318_v30, %v320_v32 }
 0x150   : > { %v325_v35 = vsel %vm323_vm5, %v324_v33, %v322_v34 }
 0x151   : > { %392 = vpush %v325_v35 }
 0x17f   :  { %271 = sbr.rel (!%p268_p4) target bundleno = 43 (0x2b), region = 79 }
 0x182   : > { %s393_s25 = spop %392 }
 0x183   : > { %s327_s26 = sadd.f32 %s393_s25, %s300_s24  }
 0x185   : > { %s608_s16 = smov %s327_s26  ;;  %v329_v37 = vstv (%p268_p4), %s327_s26 }
 0x186   :  { %v330_v38 = vadd.f32 %v329_v37, %v328_v36 }
 0x188   :  { %332 = vst.msk [vmem:[#allocation4] sm:$0x1] %vm142_vm0, %v330_v38 }
 0x18f   :  { %v336_v39 = vld [vmem:[#allocation4] sm:$0x1] }
 0x190   :  { %394 = vpush %v336_v39 }
 0x1c1   :  { %s395_s29 = spop %394 }
 0x1c2   :  { %v338_v40 = vstv %s395_s29 }
 0x1c3   :  { %339 = vst [vmem:[#allocation10] sm:$0xff] %v338_v40 }
 0x1c4   :  { %477 = shalt.err (!%p474_p9)
}
 0x1c5   :  { %s478_s6 = scalar_lea.hbm %s607_s4, 128 }
 0x1c6   :  { %p479_p10 = scmp.ne.s32.totalorder %s607_s4, %s478_s6  ;;  %p482_p11 = scmp.lt.u32.totalorder %s478_s6, %s607_s4 }
 0x1c8   :  { %p484_p12 = pnand %p482_p11, %p479_p10 }
 0x1ca   :  { %487 = shalt.err (!%p484_p12)
}
 0x1cb   :  { %349 = dma.vmem_to_hbm [thread:$0]  %s347_s28, 128, %s607_s4, [#allocation7]  }
 0x1cc   :  { %500 = dma.done.wait [#allocation7], 128  }
 0x1cd   :  { %501 = vsyncadd [#allocation7], 4294967168 }
 0x1ce   :  { %353 = vsyncpa [#allocation6], 1 }
 0x1cf   :  { %354 = vsyncpa [#allocation9], 1 }
 0x1d0   :  { %355 = vsyncpa [#allocation7], 1 }

</bundles_post_ra>
